<compile_context>
chip_gen: v7x
topology: tpu7x:2x2x1
jax: 0.10.0
libtpu: 0.0.40
codegen_flags: <defaults>
</compile_context>

<pallas_src>
import jax
import jax.numpy as jnp
from jax.experimental import pallas as pl
from jax.experimental.pallas import tpu as pltpu


def _trackmix_kernel(p_ref, a_ref, b_ref, o_ref):
    # a_ref / b_ref / o_ref: (1, D, tT) VMEM tiles; p_ref: (D, 1) VMEM tile.
    a = a_ref[...]
    b = b_ref[...]
    # Cast the parameter to the activation/compute dtype so bf16 inputs do not
    # get silently promoted to f32 (and so the store dtype matches o_ref).
    p = p_ref[...].astype(a.dtype)                 # (D, 1)
    o_ref[...] = a + p[None, :, :] * (b - a)       # broadcast (D,1) -> (1,D,tT)


def _choose_time_tile(D, T, itemsize, target_bytes=2 * 1024 * 1024):
    """Pick a lane-dense time tile (multiple of 128) of <= ~target_bytes per buffer."""
    if T % 128 != 0:
        # Fallback: full-extent block (always legal). Fine for small/odd T.
        # TODO(synk): pad T to a multiple of 128 in the wrapper for very large
        # non-aligned T instead of pulling the whole (D, T) plane.
        return T
    tT = (target_bytes // (D * itemsize)) // 128 * 128
    tT = max(128, tT)
    return min(tT, T)


def track_mixing(a, b, P):
    """a, b: (B, D, T); P: (D, 1). Returns a + P * (b - a)."""
    B, D, T = a.shape
    assert b.shape == (B, D, T)
    assert P.shape == (D, 1)

    itemsize = jnp.dtype(a.dtype).itemsize
    tT = _choose_time_tile(D, T, itemsize)
    grid = (B, pl.cdiv(T, tT))

    # 2 inputs + 1 output, double-buffered, plus the tiny resident P tile.
    tile_bytes = D * tT * itemsize
    vmem_needed = 2 * 3 * tile_bytes + 2 * D * jnp.dtype(P.dtype).itemsize
    # Explicit scoped-VMEM budget: generous headroom but safely under the
    # 64 MiB physical VMEM of a v7x TensorCore.
    vmem_limit = int(min(max(4 * vmem_needed, 32 * 1024 * 1024),
                         48 * 1024 * 1024))

    return pl.pallas_call(
        _trackmix_kernel,
        out_shape=jax.ShapeDtypeStruct((B, D, T), a.dtype),
        grid_spec=pl.GridSpec(
            grid=grid,
            in_specs=[
                # P: constant index_map -> stays resident in VMEM.
                pl.BlockSpec((D, 1), lambda i, j: (0, 0)),
                # a, b: one (1, D, tT) tile per (batch, time-tile) grid point.
                pl.BlockSpec((1, D, tT), lambda i, j: (i, 0, j)),
                pl.BlockSpec((1, D, tT), lambda i, j: (i, 0, j)),
            ],
            out_specs=pl.BlockSpec((1, D, tT), lambda i, j: (i, 0, j)),
        ),
        compiler_params=pltpu.CompilerParams(
            dimension_semantics=("parallel", "parallel"),
            vmem_limit_bytes=vmem_limit,
        ),
    )(P, a, b)


if __name__ == "__main__":
    # Small but lane-dense shapes (T a multiple of 128 so the tiled, unmasked
    # store path is exercised).
    B, D, T = 2, 32, 256

    key = jax.random.PRNGKey(0)
    ka, kb, kp = jax.random.split(key, 3)
    a = jax.random.normal(ka, (B, D, T), dtype=jnp.float32)
    b = jax.random.normal(kb, (B, D, T), dtype=jnp.float32)

    # --- check 1: zeros-init parameter (matches nn.Parameter(torch.zeros(dim, 1))) ---
    P0 = jnp.zeros((D, 1), dtype=jnp.float32)
    out0 = jax.block_until_ready(track_mixing(a, b, P0))
    assert out0.shape == (B, D, T)
    assert jnp.allclose(out0, a, atol=1e-6), "zeros-P case should return a"

    # --- check 2: non-trivial parameter, f32 ---
    P = 0.1 * jax.random.normal(kp, (D, 1), dtype=jnp.float32)
    out = jax.block_until_ready(track_mixing(a, b, P))
    ref = a + P[None, :, :] * (b - a)
    assert jnp.allclose(out, ref, atol=1e-6), "mismatch vs f32 reference"

    # --- check 3: bf16 activations with f32 parameter (kernel casts P) ---
    a16 = a.astype(jnp.bfloat16)
    b16 = b.astype(jnp.bfloat16)
    out16 = jax.block_until_ready(track_mixing(a16, b16, P))
    assert out16.dtype == jnp.bfloat16
    ref16 = a16 + P.astype(jnp.bfloat16)[None, :, :] * (b16 - a16)
    assert jnp.allclose(out16.astype(jnp.float32), ref16.astype(jnp.float32),
                        atol=2e-2), "mismatch vs bf16 reference"

    print("KERNEL_OK")
</pallas_src>

<mosaic_0001>
module attributes {stable_mosaic.version = 11 : i64} {
  func.func @_trackmix_kernel(%arg0: i32, %arg1: i32, %arg2: memref<32x1xf32, #tpu.memory_space<vmem>>, %arg3: memref<1x32x256xf32, #tpu.memory_space<vmem>>, %arg4: memref<1x32x256xf32, #tpu.memory_space<vmem>>, %arg5: memref<1x32x256xf32, #tpu.memory_space<vmem>>) attributes {dimension_semantics = [#tpu.dimension_semantics<parallel>, #tpu.dimension_semantics<parallel>], iteration_bounds = array<i64: 2, 1>, scalar_prefetch = 0 : i64, scratch_operands = 0 : i64, tpu.core_type = #tpu.core_type<tc>, window_params = [{pipeline_mode = #tpu.pipeline_mode<synchronous>, transform_indices = @transform_0, window_bounds = array<i64: 32, 1>}, {transform_indices = @transform_1, window_bounds = array<i64: 1, 32, 256>}, {transform_indices = @transform_2, window_bounds = array<i64: 1, 32, 256>}, {transform_indices = @transform_3, window_bounds = array<i64: 1, 32, 256>}]} {
    %c0 = arith.constant 0 : index
    %c0_0 = arith.constant 0 : index
    %c0_1 = arith.constant 0 : index
    %0 = vector.load %arg3[%c0, %c0_0, %c0_1] : memref<1x32x256xf32, #tpu.memory_space<vmem>>, vector<1x32x256xf32>
    %c0_2 = arith.constant 0 : index
    %c0_3 = arith.constant 0 : index
    %c0_4 = arith.constant 0 : index
    %1 = vector.load %arg4[%c0_2, %c0_3, %c0_4] : memref<1x32x256xf32, #tpu.memory_space<vmem>>, vector<1x32x256xf32>
    %c0_5 = arith.constant 0 : index
    %c0_6 = arith.constant 0 : index
    %2 = vector.load %arg2[%c0_5, %c0_6] : memref<32x1xf32, #tpu.memory_space<vmem>>, vector<32x1xf32>
    %3 = vector.shape_cast %2 : vector<32x1xf32> to vector<1x32x1xf32>
    %4 = arith.subf %1, %0 : vector<1x32x256xf32>
    %5 = vector.broadcast %3 : vector<1x32x1xf32> to vector<1x32x256xf32>
    %6 = arith.mulf %5, %4 : vector<1x32x256xf32>
    %7 = arith.addf %0, %6 : vector<1x32x256xf32>
    %c0_7 = arith.constant 0 : index
    %c0_8 = arith.constant 0 : index
    %c0_9 = arith.constant 0 : index
    %8 = vector.load %arg5[%c0_7, %c0_8, %c0_9] : memref<1x32x256xf32, #tpu.memory_space<vmem>>, vector<1x32x256xf32>
    tpu.vector_store %arg5[%c0_7, %c0_8, %c0_9], %7 {strides = array<i32>} : memref<1x32x256xf32, #tpu.memory_space<vmem>>, vector<1x32x256xf32>,
    return
  }
  func.func @transform_0(%arg0: i32, %arg1: i32) -> (i32, i32) {
    %c0_i32 = arith.constant 0 : i32
    %c0_i32_0 = arith.constant 0 : i32
    %c0_i32_1 = arith.constant 0 : i32
    return %c0_i32, %c0_i32_0 : i32, i32
  }
  func.func @transform_1(%arg0: i32, %arg1: i32) -> (i32, i32, i32) {
    %c0_i32 = arith.constant 0 : i32
    %c0_i32_0 = arith.constant 0 : i32
    return %arg0, %c0_i32, %arg1 : i32, i32, i32
  }
  func.func @transform_2(%arg0: i32, %arg1: i32) -> (i32, i32, i32) {
    %c0_i32 = arith.constant 0 : i32
    %c0_i32_0 = arith.constant 0 : i32
    return %arg0, %c0_i32, %arg1 : i32, i32, i32
  }
  func.func @transform_3(%arg0: i32, %arg1: i32) -> (i32, i32, i32) {
    %c0_i32 = arith.constant 0 : i32
    %c0_i32_0 = arith.constant 0 : i32
    return %arg0, %c0_i32, %arg1 : i32, i32, i32
  }
}

</mosaic_0001>

<bundles_post_ra>
// kernel: tpu_custom_call.1
= control target key start
LH: loop header
LB: loop body
LE: loop exit
PB: predicated region body
PF: predicated region fallthrough
CT: control target
= control target key end

     0   :  { %8 = vsyncpa [#allocation3], 0  ;;  %s1000_s0 = inlined_call_operand.vmem [shape: f32[32,1], index: 0, kind: input, shape index: {}]   ;;  %s1001_s1 = inlined_call_operand.hbm [shape: f32[2,32,256], index: 1, kind: input, shape index: {}]   ;;  %s1002_s2 = inlined_call_operand.hbm [shape: f32[2,32,256], index: 2, kind: input, shape index: {}]   ;;  %s1003_s3 = inlined_call_operand.hbm [shape: f32[2,32,256], index: 3, kind: output, shape index: {}]  }
   0x1   :  { %10 = vsyncpa [#allocation3 + $0x1], 0 }
   0x2   :  { %11 = vsyncpa [#allocation6], 0 }
   0x3   :  { %13 = vsyncpa [#allocation6 + $0x1], 0 }
   0x4   :  { %14 = vsyncpa [#allocation4], 0 }
   0x5   :  { %16 = vsyncpa [#allocation4 + $0x1], 0  ;;  %s727_s12 = smov 0   ;;  %s729_s13 = smov 0  }
   0x6   :  { %s731_s14 = smov 0   ;;  %s733_s15 = smov 0  }
   0x7   :  { %s735_s16 = smov 0   ;;  %s737_s17 = smov 0  }
   0x8 LB: > { %s455_s18 = sadd.s32 4294967295, %s697_s17   ;;  %s456_s19 = sadd.s32 4294967294, %s697_s17   ;;  %s697_s17 = sphi %s737_s17, %s22_s17   ;;  %s693_s16 = sphi %s735_s16, %s1021_s16   ;;  %s689_s15 = sphi %s733_s15, %s1020_s15   ;;  %s685_s14 = sphi %s731_s14, %s1019_s14   ;;  %s681_s13 = sphi %s729_s13, %s1018_s13   ;;  %s677_s12 = sphi %s727_s12, %s1017_s12  }
   0x9   : > { %s34_s20 = sadd.s32 1, %s693_s16  ;;  %s64_s21 = sadd.s32 1, %s685_s14 }
   0xa   : > { %p36_p0 = scmp.ge.s32.totalorder %s34_s20, 2  ;;  %p71_p1 = scmp.ne.s32.totalorder %s685_s14, %s681_s13 }
   0xb   : > { %p72_p2 = scmp.eq.s32.totalorder %s697_s17, 0  ;;  %p77_p3 = scmp.ne.s32.totalorder %s681_s13, %s677_s12 }
   0xc   : > { %s1023_s20 = smov (%p36_p0, %s34_s20), 0  ;;  %p78_p5 = scmp.eq.s32.totalorder %s455_s18, 0 }
   0xd   : > { %p768_p4 = por %p72_p2, %p71_p1  ;;  %s59_s23 = ssub.s32 %s693_s16, %s1023_s20 }
   0xe   : > { %p131_p6 = scmp.eq.s32.totalorder %s455_s18, 1  ;;  %p62_p7 = scmp.eq.s32.totalorder %s59_s23, 0 }
   0xf   : > { %p774_p8 = por %p78_p5, %p77_p3  ;;  %p137_p10 = scmp.eq.s32.totalorder %s456_s19, 1 }
  0x10   : > { %p778_p9 = por %p131_p6, %p71_p1  ;;  %p494_p13 = scmp.lt.s32.totalorder %s697_s17, 2 }
  0x11   : > { %s1007_s24 = scalar_select %p774_p8, 1, 0 }
  0x12   : > { %s1008_s25 = scalar_select %p778_p9, 1, 0 }
  0x13   : > { %s783_s26 = scalar_select %p62_p7, %s685_s14, %s64_s21  }
  0x14   : > { %p785_p11 = por %p137_p10, %p77_p3  ;;  %s792_s28 = sand.u32 1, %s685_s14  }
  0x15   : > { %s459_s29 = sshll.u32 %s792_s28, 6  ;;  %s474_s30 = sshll.u32 %s693_s16, 10 }
  0x16   : > { %s1009_s27 = scalar_select %p785_p11, 1, 0 }
  0x17   : > { %s801_s6 = scalar_lea.hbm %s1001_s1, %s474_s30  ;;  %s164_s7 = scalar_lea.vmem [#allocation2], %s459_s29 }
  0x18   : > { %s173_s8 = sshll.u32 %s164_s7, 4  ;;  %p809_p0 = pnand %p494_p13, %p768_p4  ;;  %s805_s8 = int_to_ptr.vmem [resolvable:$true] %s173_s8 }
  0x19   : > { %s161_s10 = scalar_lea.sflag [#allocation3], %s792_s28  ;;  %s551_s11 = scalar_lea.hbm %s801_s6, 1024 }
  0x1a   : > { %p552_p2 = scmp.ne.s32.totalorder %s801_s6, %s551_s11  ;;  %p553_p3 = pneg %p809_p0 }
  0x1b   : > { %s556_s21 = scalar_lea.hbm %s1001_s1, 2048  ;;  %p557_p4 = scmp.lt.u32.totalorder %s801_s6, %s1001_s1 }
  0x1c   : > { %p554_p5 = pnand %p553_p3, %p552_p2  ;;  %p558_p7 = scmp.lt.u32.totalorder %s556_s21, %s551_s11 }
  0x1d   : > { %p560_p13 = scmp.lt.u32.totalorder %s551_s11, %s801_s6 }
  0x1e   : > { %p555_p6 = pneg %p554_p5  ;;  %p559_p10 = por %p558_p7, %p557_p4 }
  0x20   : > { %p561_p12 = por %p560_p13, %p559_p10 }
  0x22   : > { %p562_p1 = pnand %p561_p12, %p555_p6 }
  0x24   : > { %565 = shalt.err (!%p562_p1)
}
  0x25   : > { %s566_s4 = scalar_lea.vmem %s805_s8, 1024  ;;  %s699_s5 = smov [#allocation2]  }
  0x26   : > { %p567_p2 = scmp.ne.s32.totalorder %s805_s8, %s566_s4  ;;  %s571_s7 = sshll.u32 %s699_s5, 4  ;;  %s572_s7 = int_to_ptr.vmem [resolvable:$false] %s571_s7 }
  0x27   : > { %s573_s18 = scalar_lea.vmem %s572_s7, 2048  ;;  %p574_p9 = scmp.lt.s32.totalorder %s805_s8, %s572_s7 }
  0x28   : > { %p569_p5 = pnand %p567_p2, %p553_p3  ;;  %p575_p4 = scmp.lt.s32.totalorder %s573_s18, %s566_s4 }
  0x2a   : > { %p570_p11 = pneg %p569_p5  ;;  %p576_p7 = por %p575_p4, %p574_p9 }
  0x2c   : > { %p577_p10 = pnand %p576_p7, %p570_p11 }
  0x2e   : > { %580 = shalt.err (!%p577_p10)
}
  0x2f   : > { %s700_s11 = smov 256   ;;  %s701_s19 = smov 16  }
  0x30   : > { %486 = dma.hbm_to_vmem [thread:$0]  (!%p809_p0), %s801_s6, 1024, %s805_s8, %s161_s10, %s700_s11, %s700_s11, %s701_s19  }
  0x31   : > { %p204_p9 = scmp.lt.s32.totalorder %s697_s17, 3  ;;  %s851_s23 = scalar_lea.hbm %s1002_s2, %s474_s30 }
  0x32   : > { %p1011_p11 = scmp.ge.s32.totalorder %s697_s17, 1  ;;  %s187_s5 = scalar_lea.vmem [#allocation5], %s459_s29 }
  0x33   : > { %s196_s7 = sshll.u32 %s187_s5, 4  ;;  %s184_s6 = scalar_lea.sflag [#allocation6], %s792_s28  ;;  %s861_s7 = int_to_ptr.vmem [resolvable:$true] %s196_s7 }
  0x34   : > { %p855_p12 = pnand %p1011_p11, %p204_p9  ;;  %s581_s8 = scalar_lea.hbm %s851_s23, 1024 }
  0x35   : > { %p582_p1 = scmp.ne.s32.totalorder %s851_s23, %s581_s8  ;;  %s586_s18 = scalar_lea.hbm %s1002_s2, 2048 }
  0x36   : > { %p587_p2 = scmp.lt.u32.totalorder %s851_s23, %s1002_s2  ;;  %p588_p5 = scmp.lt.u32.totalorder %s586_s18, %s581_s8 }
  0x37   : > { %p584_p6 = pnand %p582_p1, %p553_p3  ;;  %p590_p7 = scmp.lt.u32.totalorder %s581_s8, %s851_s23 }
  0x38   : > { %p589_p4 = por %p588_p5, %p587_p2 }
  0x39   : > { %p585_p13 = pneg %p584_p6 }
  0x3a   : > { %p591_p10 = por %p590_p7, %p589_p4 }
  0x3c   : > { %p592_p9 = pnand %p591_p10, %p585_p13 }
  0x3e   : > { %595 = shalt.err (!%p592_p9)
}
  0x3f   : > { %s596_s29 = scalar_lea.vmem %s861_s7, 1024  ;;  %s702_s5 = smov [#allocation5]  }
  0x40   : > { %p597_p11 = scmp.ne.s32.totalorder %s861_s7, %s596_s29  ;;  %s601_s30 = sshll.u32 %s702_s5, 4  ;;  %s602_s30 = int_to_ptr.vmem [resolvable:$false] %s601_s30 }
  0x41   : > { %s603_s10 = scalar_lea.vmem %s602_s30, 2048  ;;  %p604_p8 = scmp.lt.s32.totalorder %s861_s7, %s602_s30 }
  0x42   : > { %p599_p1 = pnand %p597_p11, %p553_p3  ;;  %p605_p2 = scmp.lt.s32.totalorder %s603_s10, %s596_s29 }
  0x44   : > { %p600_p6 = pneg %p599_p1  ;;  %p606_p5 = por %p605_p2, %p604_p8 }
  0x46   : > { %p607_p4 = pnand %p606_p5, %p600_p6 }
  0x48   : > { %610 = shalt.err (!%p607_p4)
}
  0x49   : > { %489 = dma.hbm_to_vmem [thread:$0]  (!%p809_p0), %s851_s23, 1024, %s861_s7, %s184_s6, %s700_s11, %s700_s11, %s701_s19  }
  0x4a   : > { %208 = sbr.rel (%p855_p12) target bundleno = 238 (0xee), region = 32  ;;  %s895_s8 = sand.u32 (!%p855_p12), 1, %s681_s13  }
  0x4b   : > { %s898_s18 = sshll.u32 (!%p855_p12), %s895_s8, 6  ;;  %s211_s9 = scalar_lea.sflag (!%p855_p12), [#allocation3], %s895_s8 }
  0x4c   : > { %s902_s21 = scalar_lea.vmem (!%p855_p12), [#allocation2], %s898_s18  ;;  %p1013_p8 = scmp.ne.s32.totalorder (!%p855_p12), %s1007_s24, 0 }
  0x51   : > { %664 = dma.done.wait (%p1013_p8), %s211_s9, 1024  }
  0x52   : > { %666 = vsyncadd (%p1013_p8), %s211_s9, 4294966272  ;;  %s220_s28 = scalar_lea.sflag [#allocation6], %s895_s8  ;;  %s910_s11 = scalar_lea.vmem [#allocation5], %s898_s18 }
  0x53   : > { %668 = dma.done.wait (%p1013_p8), %s220_s28, 1024  }
  0x54   : > { %670 = vsyncadd (%p1013_p8), %s220_s28, 4294966272  ;;  %v703_v0 = vmov 0   ;;  %v272_v1 = vld [vmem:[%s1000_s0 + $0x10] sm:$0xff]  ;;  %v270_v2 = vld [vmem:[%s1000_s0] sm:$0xff]  ;;  %s476_s5 = sshll.u32 %s689_s15, 10  ;;  %s250_s30 = scalar_lea.vmem [#allocation7], %s898_s18 }
  0x55   : > { %550 = vset.pattern.permute.xlu1 %v703_v0  ;;  %549 = vset.pattern.permute.xlu0 %v703_v0  ;;  %v273_v3 = vld [vmem:[%s1000_s0 + $0x18] sm:$0xff]  ;;  %v271_v4 = vld [vmem:[%s1000_s0 + $0x8] sm:$0xff]  ;;  %v258_v5 = vld [vmem:[%s902_s21 + $0x20] sm:$0xff]  ;;  %s342_s10 = sshll.u32 %s250_s30, 4  ;;  %s949_s28 = scalar_lea.hbm %s1003_s3, %s476_s5  ;;  %s951_s10 = int_to_ptr.vmem [resolvable:$true] %s342_s10 }
  0x56   : > { %294 = vperm.xlu1 %550, %v272_v1   ;;  %284 = vperm.xlu0 %549, %v270_v2   ;;  %v259_v6 = vld [vmem:[%s902_s21 + $0x28] sm:$0xff]  ;;  %v266_v7 = vld [vmem:[%s910_s11 + $0x20] sm:$0xff]  ;;  %v260_v13 = vld [vmem:[%s902_s21 + $0x30] sm:$0xff]  ;;  %s327_s15 = scalar_lea.sflag [#allocation4], %s895_s8  ;;  %s611_s18 = scalar_lea.vmem %s951_s10, 1024 }
  0x57   : > { %v267_v8 = vld [vmem:[%s910_s11 + $0x28] sm:$0xff]  ;;  %v254_v9 = vld [vmem:[%s902_s21] sm:$0xff]  ;;  %v261_v14 = vld [vmem:[%s902_s21 + $0x38] sm:$0xff]  ;;  %v278_v18 = vsub.f32 %v266_v7, %v258_v5  ;;  %p612_p0 = scmp.ne.s32.totalorder %s951_s10, %s611_s18  ;;  %p1014_p3 = scmp.ne.s32.totalorder %s1008_s25, 0 }
  0x58   : > { %v255_v10 = vld [vmem:[%s902_s21 + $0x8] sm:$0xff]  ;;  %v262_v11 = vld [vmem:[%s910_s11] sm:$0xff]  ;;  %v268_v15 = vld [vmem:[%s910_s11 + $0x30] sm:$0xff]  ;;  %v279_v19 = vsub.f32 %v267_v8, %v259_v6 }
  0x59   : > { %v263_v12 = vld [vmem:[%s910_s11 + $0x8] sm:$0xff]  ;;  %v269_v16 = vld [vmem:[%s910_s11 + $0x38] sm:$0xff]  ;;  %v256_v17 = vld [vmem:[%s902_s21 + $0x10] sm:$0xff]  ;;  %v274_v20 = vsub.f32 %v262_v11, %v254_v9  ;;  %v280_v27 = vsub.f32 %v268_v15, %v260_v13  ;;  %p613_p12 = pnand %p612_p0, %p1014_p3 }
  0x5a   : > { %299 = vperm.xlu1 %550, %v273_v3   ;;  %289 = vperm.xlu0 %549, %v271_v4   ;;  %v275_v21 = vsub.f32 %v263_v12, %v255_v10  ;;  %v257_v22 = vld [vmem:[%s902_s21 + $0x18] sm:$0xff]  ;;  %v264_v23 = vld [vmem:[%s910_s11 + $0x10] sm:$0xff]  ;;  %v281_v28 = vsub.f32 %v269_v16, %v261_v14 }
  0x5b   : > { %v265_v24 = vld [vmem:[%s910_s11 + $0x18] sm:$0xff]  ;;  %v276_v29 = vsub.f32 %v264_v23, %v256_v17  ;;  %p614_p13 = pneg %p613_p12  ;;  %s704_s11 = smov [#allocation7]  }
  0x5c   : > { %v277_v30 = vsub.f32 %v265_v24, %v257_v22  ;;  %s615_s19 = sshll.u32 %s704_s11, 4  ;;  %s616_s19 = int_to_ptr.vmem [resolvable:$false] %s615_s19 }
  0x5d   : > { %s617_s23 = scalar_lea.vmem %s616_s19, 2048  ;;  %p618_p7 = scmp.lt.s32.totalorder %s951_s10, %s616_s19 }
  0x5e   : > { %p619_p10 = scmp.lt.s32.totalorder %s617_s23, %s611_s18 }
  0x60   : > { %p620_p9 = por %p619_p10, %p618_p7 }
  0x62   : > { %p621_p11 = pnand %p620_p9, %p614_p13 }
  0xd5   : > { %v295_v25 = vpop.permute.xlu1 %294  ;;  %v285_v26 = vpop.permute.xlu0 %284 }
  0xd6   : > { %v306_v31 = vmul.f32 %v295_v25, %v278_v18  ;;  %v307_v32 = vmul.f32 %v295_v25, %v279_v19  ;;  %v302_v33 = vmul.f32 %v285_v26, %v274_v20  ;;  %v303_v34 = vmul.f32 %v285_v26, %v275_v21 }
  0xd8   : > { %v314_v35 = vadd.f32 %v306_v31, %v258_v5  ;;  %v315_v36 = vadd.f32 %v307_v32, %v259_v6  ;;  %v310_v37 = vadd.f32 %v302_v33, %v254_v9  ;;  %v311_v38 = vadd.f32 %v303_v34, %v255_v10 }
  0xd9   : > { %v300_v39 = vpop.permute.xlu1 %299  ;;  %v290_v40 = vpop.permute.xlu0 %289 }
  0xda   : > { %322 = vst [vmem:[%s250_s30 + $0x20] sm:$0xff] %v314_v35  ;;  %323 = vst [vmem:[%s250_s30 + $0x28] sm:$0xff] %v315_v36  ;;  %v308_v41 = vmul.f32 %v300_v39, %v280_v27  ;;  %v309_v42 = vmul.f32 %v300_v39, %v281_v28  ;;  %v304_v43 = vmul.f32 %v290_v40, %v276_v29 }
  0xdb   : > { %318 = vst [vmem:[%s250_s30] sm:$0xff] %v310_v37  ;;  %319 = vst [vmem:[%s250_s30 + $0x8] sm:$0xff] %v311_v38  ;;  %v305_v44 = vmul.f32 %v290_v40, %v277_v30 }
  0xdc   : > { %v316_v45 = vadd.f32 %v308_v41, %v260_v13  ;;  %v317_v46 = vadd.f32 %v309_v42, %v261_v14  ;;  %v312_v47 = vadd.f32 %v304_v43, %v256_v17 }
  0xdd   : > { %v313_v48 = vadd.f32 %v305_v44, %v257_v22 }
  0xde   : > { %324 = vst [vmem:[%s250_s30 + $0x30] sm:$0xff] %v316_v45  ;;  %325 = vst [vmem:[%s250_s30 + $0x38] sm:$0xff] %v317_v46 }
  0xdf   : > { %320 = vst [vmem:[%s250_s30 + $0x10] sm:$0xff] %v312_v47  ;;  %321 = vst [vmem:[%s250_s30 + $0x18] sm:$0xff] %v313_v48 }
  0xe0   : > { %624 = shalt.err (!%p621_p11)
}
  0xe1   : > { %s625_s4 = scalar_lea.hbm %s949_s28, 1024  ;;  %s629_s6 = scalar_lea.hbm %s1003_s3, 2048 }
  0xe2   : > { %p626_p1 = scmp.ne.s32.totalorder %s949_s28, %s625_s4  ;;  %p630_p5 = scmp.lt.u32.totalorder %s949_s28, %s1003_s3 }
  0xe3   : > { %p631_p4 = scmp.lt.u32.totalorder %s629_s6, %s625_s4  ;;  %p633_p0 = scmp.lt.u32.totalorder %s625_s4, %s949_s28 }
  0xe4   : > { %p627_p6 = pnand %p626_p1, %p1014_p3 }
  0xe5   : > { %p632_p8 = por %p631_p4, %p630_p5 }
  0xe6   : > { %p628_p2 = pneg %p627_p6 }
  0xe7   : > { %p634_p12 = por %p633_p0, %p632_p8 }
  0xe9   : > { %p635_p13 = pnand %p634_p12, %p628_p2 }
  0xeb   : > { %638 = shalt.err (!%p635_p13)
}
  0xec   : > { %s705_s5 = smov 256   ;;  %s706_s30 = smov 16  }
  0xed   : > { %481 = dma.vmem_to_hbm [thread:$0]  (%p1014_p3), %s951_s10, 1024, %s949_s28, %s327_s15, %s705_s5, %s705_s5, %s706_s30  }
  0xee PF: > { %s357_s9 = sand.u32 1, %s677_s12   ;;  %p1015_p7 = scmp.ne.s32.totalorder %s1009_s27, 0 }
  0xef   : > { %p1016_p10 = scmp.ge.s32.totalorder %s697_s17, 2  ;;  %s358_s21 = scalar_lea.sflag [#allocation4], %s357_s9 }
  0xf1   : > { %p491_p9 = pnand %p1016_p10, %p1015_p7 }
  0xf3   : > { %672 = dma.done.wait (!%p491_p9), %s358_s21, 1024  }
  0xf4   : > { %674 = vsyncadd (!%p491_p9), %s358_s21, 4294966272  ;;  %s22_s17 = sadd.s32 1, %s697_s17   ;;  %s1017_s12 = smov %s681_s13 }
  0xf5   : > { %p19_p11 = scmp.ge.s32.totalorder %s22_s17, 4   ;;  %s1018_s13 = smov %s685_s14 }
  0xf6   : > { %s1019_s14 = smov %s783_s26  ;;  %s1020_s15 = smov %s693_s16 }
  0xf7   : > { %s1021_s16 = smov %s1023_s20  ;;  %21 = sbr.rel (!%p19_p11) target bundleno = 8 (0x8), region = 90 }
  0xfe   :  { %363 = vsyncpa [#allocation3], 1 }
  0xff   :  { %365 = vsyncpa [#allocation3 + $0x1], 1 }
 0x100   :  { %366 = vsyncpa [#allocation6], 1 }
 0x101   :  { %368 = vsyncpa [#allocation6 + $0x1], 1 }
 0x102   :  { %369 = vsyncpa [#allocation4], 1 }
 0x103   :  { %371 = vsyncpa [#allocation4 + $0x1], 1 }

</bundles_post_ra>
